<compile_context>
chip_gen: v5e
topology: v5e:2x2
jax: 0.10.0
libtpu: 0.0.40
codegen_flags: <defaults>
</compile_context>

<pallas_src>
import functools

import jax
import jax.numpy as jnp
from jax.experimental import pallas as pl
from jax.experimental.pallas import tpu as pltpu


_LANE = 128
_MIN_PARALLEL_STEPS = 4  # >=2 grid steps per TensorCore on dual-TC chips (v7x)


def _round_down(x, m):
    return (x // m) * m


def _pad_up(x, m):
    return ((x + m - 1) // m) * m


def _cdiv(a, b):
    return -(-a // b)


def _sublane_align(itemsize):
    # f32 -> 8, bf16 -> 16, int8/fp8 -> 32 (packed dtypes stack along sublanes)
    return 8 * max(1, 4 // itemsize)


def _vmem_budget_and_limit():
    """Per-generation VMEM budget (tile sizing) and scoped limit (for Mosaic)."""
    cap = None
    try:
        cap = getattr(pltpu.get_tpu_info(), "vmem_capacity_bytes", None)
    except Exception:  # not available -> stay conservative (valid on v5e/v6e/v7x)
        cap = None
    if cap is not None and cap >= (100 << 20):   # v5e / v6e: 128 MiB physical VMEM
        return 64 << 20, 96 << 20
    return 36 << 20, 48 << 20                    # v7x (64 MiB VMEM) or unknown


def _pick_tile(total, align, per_unit_bytes, fixed_bytes, budget,
               other_parallel, max_tile=None):
    """Largest align-aligned tile along `total` whose double-buffered, layout-padded
    working set fits `budget`; then halve until the grid has at least
    _MIN_PARALLEL_STEPS parallel steps so both TensorCores get work."""
    if total <= align:
        return total                                            # full-extent block
    by_budget = _round_down(max(budget - fixed_bytes, 0) // per_unit_bytes, align)
    tile = min(_round_down(total, align), max(by_budget, align))
    if max_tile is not None:
        tile = min(tile, max(_round_down(max_tile, align), align))
    tile = max(tile, align)
    while tile > align and other_parallel * _cdiv(total, tile) < _MIN_PARALLEL_STEPS:
        new_tile = max(align, _round_down(tile // 2, align))
        if new_tile == tile:
            break
        tile = new_tile
    return tile


def _kernel_length_last(w_ref, u_ref, o_ref, *, compute_dtype):
    # w_ref: (P, H), u_ref: (H, TL), o_ref: (P, TL); lane axis = length tile (lane-dense out).
    u = u_ref[...]
    if compute_dtype is not None and u.dtype != compute_dtype:
        u = u.astype(compute_dtype)               # per-tile cast, hidden under DMA
    o_ref[...] = jnp.dot(w_ref[...], u,
                         preferred_element_type=jnp.float32).astype(o_ref.dtype)


def _kernel_rows(wt_ref, u_ref, o_ref, *, compute_dtype):
    # wt_ref: (H, P), u_ref: (TR, H), o_ref: (TR, P); native row-major (B*L, H) layout,
    # no HBM transpose of u is ever materialized.
    u = u_ref[...]
    if compute_dtype is not None and u.dtype != compute_dtype:
        u = u.astype(compute_dtype)
    o_ref[...] = jnp.dot(u, wt_ref[...],
                         preferred_element_type=jnp.float32).astype(o_ref.dtype)


def linear_reservoir_interval(w_in, u, *, length_last=True,
                              compute_dtype=None, max_length_tile=None):
    """Pallas equivalent of LinearReservoirInterval.forward.

    w_in: (d_output, d_input)
    u:    (B, d_input, L) if length_last else (B, L, d_input)
    compute_dtype: optional MXU-operand dtype (e.g. jnp.bfloat16). Accumulation is always
                   f32 and the output keeps u.dtype. Default None == u's native dtype,
                   matching the f32 PyTorch module semantics.
    """
    out_dtype = u.dtype
    P, H = w_in.shape
    cd = jnp.dtype(compute_dtype) if compute_dtype is not None else jnp.dtype(u.dtype)
    w = w_in.astype(cd)                           # tiny host-side cast of W only

    u_isz = jnp.dtype(u.dtype).itemsize
    o_isz = jnp.dtype(out_dtype).itemsize
    w_isz = cd.itemsize
    budget, vmem_limit = _vmem_budget_and_limit()
    cd_kernel = cd if compute_dtype is not None else None

    if length_last:
        B, H_u, L = u.shape
        assert H_u == H, "d_input mismatch"
        # Length tile lives on the lane axis. Layout-padded, double-buffered bytes per lane:
        per_l = 2 * (_pad_up(H, _sublane_align(u_isz)) * u_isz
                     + _pad_up(P, _sublane_align(o_isz)) * o_isz)
        # W block has a constant index_map (fetched once); counted double-buffered to keep
        # the budget honest.  (pipeline_mode=pl.Buffered(1) would save ~2*P*H*itemsize.)
        w_bytes = 2 * _pad_up(P, _sublane_align(w_isz)) * _pad_up(H, _LANE) * w_isz
        tl = _pick_tile(L, _LANE, per_l, w_bytes, budget, B, max_length_tile)
        grid = (B, _cdiv(L, tl))
        kernel = functools.partial(_kernel_length_last, compute_dtype=cd_kernel)
        in_specs = [
            pl.BlockSpec((P, H), lambda b, l: (0, 0)),
            pl.BlockSpec((pl.Squeezed(), H, tl), lambda b, l: (b, 0, l)),
        ]
        out_specs = pl.BlockSpec((pl.Squeezed(), P, tl), lambda b, l: (b, 0, l))
        out_shape = jax.ShapeDtypeStruct((B, P, L), out_dtype)
        dims = ("parallel", "parallel")
        call_args = (w, u)
        post = lambda o: o
        n_out = B * P * L
    else:
        B, L, H_u = u.shape
        assert H_u == H, "d_input mismatch"
        # Flatten to (B*L, H): free row-major reshape; one long parallel row axis that
        # spans batch boundaries and load-balances across TensorCores even when B is small.
        rows = B * L
        u_flat = u.reshape(rows, H)
        align = _sublane_align(u_isz)
        # NOTE: with P < 128 the (TR, P) output tile is lane-sparse (masked stores); if the
        # caller can accept (B, P, L) output instead, the length_last=True path is lane-dense.
        per_row = 2 * (_pad_up(H, _LANE) * u_isz + _pad_up(P, _LANE) * o_isz)
        w_bytes = 2 * _pad_up(H, _sublane_align(w_isz)) * _pad_up(P, _LANE) * w_isz
        tr = _pick_tile(rows, align, per_row, w_bytes, budget, 1, max_length_tile)
        grid = (_cdiv(rows, tr),)
        kernel = functools.partial(_kernel_rows, compute_dtype=cd_kernel)
        in_specs = [
            pl.BlockSpec((H, P), lambda r: (0, 0)),
            pl.BlockSpec((tr, H), lambda r: (r, 0)),
        ]
        out_specs = pl.BlockSpec((tr, P), lambda r: (r, 0))
        out_shape = jax.ShapeDtypeStruct((rows, P), out_dtype)
        dims = ("parallel",)
        call_args = (w.T, u_flat)                 # tiny (H,P) weight transpose; u untouched
        post = lambda o: o.reshape(B, L, P)       # free reshape back
        n_out = rows * P

    cost = pl.CostEstimate(
        flops=2 * B * P * H * L,
        transcendentals=0,
        bytes_accessed=(u.size * u_isz + P * H * w_isz + n_out * o_isz),
    )

    out = pl.pallas_call(
        kernel,
        out_shape=out_shape,
        grid_spec=pl.GridSpec(grid=grid, in_specs=in_specs, out_specs=out_specs),
        compiler_params=pltpu.CompilerParams(
            dimension_semantics=dims,
            vmem_limit_bytes=vmem_limit,
        ),
        cost_estimate=cost,
    )(*call_args)
    return post(out)


def make_w_in(key, d_input, d_output, min_value=0.0, max_value=1.0, dtype=jnp.float32):
    # TODO(synk): ReservoirMatrix.uniform_interval uses torch RNG; this is a deterministic
    # JAX stand-in producing the same distribution (uniform in [min_value, max_value]).
    return jax.random.uniform(
        key, (d_output, d_input), dtype=dtype, minval=min_value, maxval=max_value
    )


if __name__ == "__main__":
    key = jax.random.PRNGKey(0)
    k_w, k_u1, k_u2, k_u3 = jax.random.split(key, 4)

    B, d_input, d_output = 2, 32, 16
    w_in = make_w_in(k_w, d_input, d_output, min_value=0.0, max_value=1.0)

    # 1) length_last=True, tiny L (single full-extent tile), native f32 (drop-in numerics).
    L1 = 8
    u1 = jax.random.normal(k_u1, (B, d_input, L1), dtype=jnp.float32)
    out1 = jax.block_until_ready(
        linear_reservoir_interval(w_in, u1, length_last=True))
    ref1 = jnp.einsum("ph,bhl->bpl", w_in, u1)
    assert out1.shape == (B, d_output, L1)
    assert jnp.allclose(out1, ref1, atol=1e-5, rtol=1e-5)

    # 2) length_last=True, L tiled over the lane axis, bf16 MXU operands cast in-kernel
    #    (u stays f32 in HBM; no wrapper-side cast pass).
    L2 = 256
    u2 = jax.random.normal(k_u2, (B, d_input, L2), dtype=jnp.float32)
    out2 = jax.block_until_ready(
        linear_reservoir_interval(w_in, u2, length_last=True, compute_dtype=jnp.bfloat16))
    ref2 = jnp.einsum("ph,bhl->bpl", w_in, u2)
    assert out2.shape == (B, d_output, L2)
    assert jnp.allclose(out2, ref2, atol=5e-2, rtol=5e-2)

    # 3) length_last=False: flattened (B*L, H) row tiles, native f32, no u transpose.
    L3 = 16
    u3 = jax.random.normal(k_u3, (B, L3, d_input), dtype=jnp.float32)
    out3 = jax.block_until_ready(
        linear_reservoir_interval(w_in, u3, length_last=False))
    ref3 = jnp.einsum("ph,blh->blp", w_in, u3)
    assert out3.shape == (B, L3, d_output)
    assert jnp.allclose(out3, ref3, atol=1e-5, rtol=1e-5)

    print("KERNEL_OK")
</pallas_src>

<mosaic_0001>
module attributes {stable_mosaic.version = 11 : i64} {
  func.func @_kernel_length_last(%arg0: i32, %arg1: i32, %arg2: memref<16x32xf32, #tpu.memory_space<vmem>>, %arg3: memref<1x32x8xf32, #tpu.memory_space<vmem>>, %arg4: memref<1x16x8xf32, #tpu.memory_space<vmem>>) attributes {dimension_semantics = [#tpu.dimension_semantics<parallel>, #tpu.dimension_semantics<parallel>], iteration_bounds = array<i64: 2, 1>, scalar_prefetch = 0 : i64, scratch_operands = 0 : i64, tpu.core_type = #tpu.core_type<tc>, window_params = [{pipeline_mode = #tpu.pipeline_mode<synchronous>, transform_indices = @transform_0, window_bounds = array<i64: 16, 32>}, {transform_indices = @transform_1, window_bounds = array<i64: 1, 32, 8>}, {transform_indices = @transform_2, window_bounds = array<i64: 1, 16, 8>}]} {
    %c0 = arith.constant 0 : index
    %c0_0 = arith.constant 0 : index
    %c0_1 = arith.constant 0 : index
    %0 = vector.load %arg3[%c0, %c0_0, %c0_1] : memref<1x32x8xf32, #tpu.memory_space<vmem>>, vector<1x32x8xf32>
    %1 = vector.shape_cast %0 : vector<1x32x8xf32> to vector<32x8xf32>
    %c0_2 = arith.constant 0 : index
    %c0_3 = arith.constant 0 : index
    %2 = vector.load %arg2[%c0_2, %c0_3] : memref<16x32xf32, #tpu.memory_space<vmem>>, vector<16x32xf32>
    %cst = arith.constant dense<0.000000e+00> : vector<16x8xf32>
    %3 = tpu.matmul %2, %1, %cst {dimension_numbers = #tpu.dot_dimension_numbers<[1], [0], [0], [1], [0, 0, 1, 1], [], []>} : vector<16x32xf32>, vector<32x8xf32>, vector<16x8xf32> -> vector<16x8xf32>
    %c0_4 = arith.constant 0 : index
    %c0_5 = arith.constant 0 : index
    %c0_6 = arith.constant 0 : index
    %4 = vector.load %arg4[%c0_4, %c0_5, %c0_6] : memref<1x16x8xf32, #tpu.memory_space<vmem>>, vector<1x16x8xf32>
    %5 = vector.shape_cast %4 : vector<1x16x8xf32> to vector<16x8xf32>
    %6 = vector.shape_cast %3 : vector<16x8xf32> to vector<1x16x8xf32>
    tpu.vector_store %arg4[%c0_4, %c0_5, %c0_6], %6 {strides = array<i32>} : memref<1x16x8xf32, #tpu.memory_space<vmem>>, vector<1x16x8xf32>,
    return
  }
  func.func @transform_0(%arg0: i32, %arg1: i32) -> (i32, i32) {
    %c0_i32 = arith.constant 0 : i32
    %c0_i32_0 = arith.constant 0 : i32
    %c0_i32_1 = arith.constant 0 : i32
    return %c0_i32, %c0_i32_0 : i32, i32
  }
  func.func @transform_1(%arg0: i32, %arg1: i32) -> (i32, i32, i32) {
    %c0_i32 = arith.constant 0 : i32
    %c0_i32_0 = arith.constant 0 : i32
    return %arg0, %c0_i32, %arg1 : i32, i32, i32
  }
  func.func @transform_2(%arg0: i32, %arg1: i32) -> (i32, i32, i32) {
    %c0_i32 = arith.constant 0 : i32
    %c0_i32_0 = arith.constant 0 : i32
    return %arg0, %c0_i32, %arg1 : i32, i32, i32
  }
}

</mosaic_0001>

<bundles_post_ra>
// kernel: tpu_custom_call.1
= control target key start
LH: loop header
LB: loop body
LE: loop exit
PB: predicated region body
PF: predicated region fallthrough
CT: control target
= control target key end

     0   :  { %s379_s9 = smov 0   ;;  %s381_s10 = smov 0   ;;  %s418_s0 = inlined_call_operand.vmem [shape: f32[16,32], index: 0, kind: input, shape index: {}]   ;;  %s419_s1 = inlined_call_operand.vmem [shape: f32[2,32,8], index: 1, kind: input, shape index: {}]   ;;  %s420_s2 = inlined_call_operand.vmem [shape: f32[2,16,8], index: 2, kind: output, shape index: {}]  }
   0x1   :  { %s383_s11 = smov 0  }
   0x2 LB: > { %s24_s12 = sadd.s32 1, %s358_s10  ;;  %p301_p0 = scmp.ge.s32.totalorder %s362_s11, 1  ;;  %s362_s11 = sphi %s383_s11, %s12_s11   ;;  %s358_s10 = sphi %s381_s10, %s422_s10   ;;  %s354_s9 = sphi %s379_s9, %s421_s9  }
   0x3   : > { %p26_p1 = scmp.ge.s32.totalorder %s24_s12, 2  ;;  %p131_p2 = scmp.lt.s32.totalorder %s362_s11, 3 }
   0x5   : > { %s424_s12 = smov (%p26_p1, %s24_s12), 0  ;;  %p132_p3 = pnand %p301_p0, %p131_p2 }
   0x6   : > { %p159_p4 = scmp.lt.s32.totalorder (!%p132_p3), %s354_s9, 1 }
   0x7   : > { %135 = sbr.rel (%p132_p3) target bundleno = 151 (0x97), region = 28 }
   0xc   : > { %s426_s9 = smov (!%p159_p4, %s354_s9), 1  ;;  %v179_v4 = vld [vmem:[%s418_s0] sm:$0xff]  ;;  %vm181_vm0 = vcmask 261120   ;;  %v180_v5 = vld [vmem:[%s418_s0 + $0x8] sm:$0xff]  ;;  %vm211_vm1 = vcmask 64512  }
   0xd   : > { %s310_s13 = sshll.u32 %s426_s9, 5  ;;  %s311_s21 = sshll.u32 %s426_s9, 4 }
   0xe   : > { %s166_s16 = scalar_lea.vmem %s419_s1, %s310_s13  ;;  %s174_s24 = scalar_lea.vmem %s420_s2, %s311_s21 }
   0xf   : > { %v178_v0 = vld [vmem:[%s166_s16 + $0x18] sm:$0xff]  ;;  %v177_v1 = vld [vmem:[%s166_s16 + $0x10] sm:$0xff]  ;;  %v176_v2 = vld [vmem:[%s166_s16 + $0x8] sm:$0xff] }
  0x10   : > { %200 = vmatpush.msra.mxu0 %v178_v0  ;;  %312 = vmatpush.msra.mxu1 %v178_v0  ;;  %v175_v3 = vld [vmem:[%s166_s16] sm:$0xff] }
  0x12   : > { %201 = vmatpush.msra.mxu0 %v177_v1  ;;  %313 = vmatpush.msra.mxu1 %v177_v1 }
  0x14   : > { %202 = vmatpush.msra.mxu0 %v176_v2  ;;  %314 = vmatpush.msra.mxu1 %v176_v2 }
  0x16   : > { %203 = vmatpush.msra.mxu0 %v175_v3  ;;  %315 = vmatpush.msra.mxu1 %v175_v3 }
  0x17   : > { %306 = vmatmul.msk.f32.vlgmr.msra.gmra.mxu0 %vm181_vm0, %v179_v4  ;;  %307 = vmatmul.msk.f32.vlgmr.msra.gmra.mxu1 %vm181_vm0, %v180_v5 }
  0x94   : > { %v205_v6 = vpop.f32.mrf.mxu0  ;;  %v208_v7 = vpop.f32.mrf.mxu1 }
  0x95   : > { %212 = vst.msk [vmem:[%s174_s24] sm:$0xff] %vm211_vm1, %v205_v6 }
  0x96   : > { %213 = vst.msk [vmem:[%s174_s24 + $0x8] sm:$0xff] %vm211_vm1, %v208_v7 }
  0x97 PF: > { %s12_s11 = sadd.s32 1, %s362_s11   ;;  %s421_s9 = smov %s358_s10 }
  0x98   : > { %p9_p5 = scmp.ge.s32.totalorder %s12_s11, 4   ;;  %s422_s10 = smov %s424_s12 }
  0x9a   :  { %11 = sbr.rel (!%p9_p5) target bundleno = 2 (0x2), region = 58 }

</bundles_post_ra>
